<compile_context>
chip_gen: v6e
topology: v6e:2x2x1
jax: 0.10.0
libtpu: 0.0.40
codegen_flags: <defaults>
</compile_context>

<pallas_src>
import functools

import jax
import jax.numpy as jnp
import numpy as np
from jax.experimental import pallas as pl
from jax.experimental.pallas import tpu as pltpu


def _dwconv_kernel(x_ref, w_ref, b_ref, o_ref, *, C):
    """Depthwise 3x3 conv on a block of images, lane-dense (H, W*C) layout.

    x_ref: (Bt, H, W*C)  unpadded input images (VMEM)
    w_ref: (9,  8, W*C)  per-tap weights, pre-broadcast over 8 rows, border
                         lanes of the kw=0 / kw=2 taps pre-zeroed (VMEM, resident)
    b_ref: (8,  W*C)     bias, pre-broadcast over 8 rows (VMEM, resident)
    o_ref: (Bt, H, W*C)  output images (VMEM)
    """
    Bt, H, WC = o_ref.shape
    R = 8  # row stripe == sublane count; bounds the live accumulator size

    # Single hoisted zero halo row (padding=1 semantics at the image top/bottom).
    zrow = jnp.zeros((1, WC), jnp.float32)

    def one_image(b, carry):
        # b is a dynamic image index within this grid block (fori_loop keeps
        # the live range / compile time bounded even for large Bt).
        for r0 in range(0, H, R):          # 8-row output stripes (static unroll)
            rs = min(R, H - r0)

            def rows(dr):
                # Rows r0+dr .. r0+rs-1+dr of image b, zero-filled outside the
                # image.  Middle stripes are a single overlapping VMEM window
                # load; only the first/last stripe concatenates one zero row.
                lo, hi = r0 + dr, r0 + rs + dr
                lo_c, hi_c = max(lo, 0), min(hi, H)
                parts = []
                if lo < lo_c:
                    parts.append(zrow)
                if hi_c > lo_c:
                    parts.append(x_ref[b, lo_c:hi_c, :].astype(jnp.float32))
                if hi > hi_c:
                    parts.append(zrow)
                return parts[0] if len(parts) == 1 else jnp.concatenate(parts, axis=0)

            up, mid, down = rows(-1), rows(0), rows(1)

            # Accumulator starts as the bias slab (no zero broadcast, no extra add).
            acc = b_ref[0:rs, :]

            # 3x3 stencil = 9 multiply-accumulates.  Width taps are lane
            # rotations by C on the XLU; the wrap-around at the left/right
            # image border is multiplied by weight lanes that were zeroed
            # host-side, so no in-kernel border mask is needed.
            for base, slab in ((0, up), (3, mid), (6, down)):
                left = pltpu.roll(slab, shift=C, axis=1)        # reads x[., w-1]
                right = pltpu.roll(slab, shift=WC - C, axis=1)  # reads x[., w+1]
                acc = acc + left * w_ref[base + 0, 0:rs, :]
                acc = acc + slab * w_ref[base + 1, 0:rs, :]
                acc = acc + right * w_ref[base + 2, 0:rs, :]

            # Lane-dense (rs, W*C) store; full unmasked tiles when rs == 8.
            o_ref[b, r0:r0 + rs, :] = acc.astype(o_ref.dtype)
        return carry

    jax.lax.fori_loop(0, Bt, one_image, 0)


def dwconv_pallas(x, weight, bias, H, W, *, block_batch=None):
    """x: (B, N, C) with N == H*W; weight: (3, 3, C); bias: (C,). Returns (B, N, C).

    Works for f32 or bf16 `x` (accumulation is always f32).  Requires
    W*C % 128 == 0 so the (H, W*C) layout is lane-dense (unmasked stores).
    """
    B, N, C = x.shape
    assert N == H * W
    WC = W * C
    if WC % 128 != 0:
        # TODO(synk): add a channel-padding fallback for W*C not a multiple of 128.
        raise ValueError(
            f"W*C = {W}*{C} = {WC} must be a multiple of 128 for the lane-dense layout.")

    # (B, N, C) -> (B, H, W*C): pure metadata reshape (channel-last input is
    # already contiguous as (B, H, W, C)).  No HBM padding pass — the row halo
    # is handled in-kernel and the column halo via zeroed border weight lanes.
    x_img = x.reshape(B, H, WC)

    # Tap-major, lane-dense parameter slabs:
    #   w9[k, c] = weight[kh, kw, c] with k = kh*3 + kw.
    # Border lanes are zeroed so the in-kernel lane *rotation* (which wraps)
    # contributes exactly zero at the image's left/right border:
    #   kw=0 taps (k=0,3,6): output column 0 must not read column W-1.
    #   kw=2 taps (k=2,5,8): output column W-1 must not read column 0.
    w9 = jnp.asarray(weight, jnp.float32).reshape(9, C)
    w_tiled = jnp.tile(w9, (1, W))                               # (9, W*C)
    col_blk = np.repeat(np.arange(W), C)                         # lane -> column index
    border_mask = np.ones((9, WC), np.float32)
    for k in (0, 3, 6):
        border_mask[k, col_blk == 0] = 0.0
    for k in (2, 5, 8):
        border_mask[k, col_blk == W - 1] = 0.0
    w_tiled = w_tiled * jnp.asarray(border_mask)
    # Pre-broadcast across the 8-row stripe so each tap multiply is a plain
    # full-vreg vmul (no per-use sublane broadcast). Tiny (<= a few hundred KiB),
    # DMA'd once and kept resident via a constant index_map.
    w_slab = jnp.broadcast_to(w_tiled[:, None, :], (9, 8, WC))   # (9, 8, W*C)
    b_slab = jnp.tile(jnp.asarray(bias, jnp.float32).reshape(1, C), (8, W))  # (8, W*C)

    # Batch-tile heuristic: ~4 MiB of input per grid step (double-buffered
    # in + out = 4x block stays under the 32 MiB scoped VMEM limit we request,
    # which is valid on every generation incl. v5e's 16 MiB default / v7x's
    # 64 MiB physical).  On larger batches cap the tile at B//4 so the
    # "parallel" grid axis gives v7x's two TensorCores >= 2 pipelined steps each.
    per_image = H * WC * x.dtype.itemsize
    if block_batch is not None:
        bt = int(max(1, min(B, block_batch)))
    else:
        target_bytes = 4 << 20
        bt = int(max(1, min(B, target_bytes // max(per_image, 1))))
        if B >= 4:
            bt = min(bt, max(1, B // 4))

    # Pad B up to a multiple of bt (never degrade to bt=1 on awkward batch sizes).
    Bp = pl.cdiv(B, bt) * bt
    if Bp != B:
        x_img = jnp.concatenate(
            [x_img, jnp.zeros((Bp - B, H, WC), x_img.dtype)], axis=0)
    grid = (Bp // bt,)

    # TODO(synk): for very large feature maps (per-image block >> a few MiB),
    # additionally stripe H across the grid with 1-row halo blocks.
    kernel = functools.partial(_dwconv_kernel, C=C)
    out = pl.pallas_call(
        kernel,
        out_shape=jax.ShapeDtypeStruct((Bp, H, WC), x.dtype),
        grid=grid,
        in_specs=[
            pl.BlockSpec((bt, H, WC), lambda i: (i, 0, 0)),
            pl.BlockSpec((9, 8, WC), lambda i: (0, 0, 0)),
            pl.BlockSpec((8, WC), lambda i: (0, 0)),
        ],
        out_specs=pl.BlockSpec((bt, H, WC), lambda i: (i, 0, 0)),
        compiler_params=pltpu.CompilerParams(
            dimension_semantics=("parallel",),
            vmem_limit_bytes=32 * 1024 * 1024,
        ),
    )(x_img, w_slab, b_slab)

    return out[:B].reshape(B, H * W, C)


def _reference_dwconv(x, weight, bias, H, W):
    """Pure-JAX reference mirroring the PyTorch module exactly (NCHW path)."""
    B, N, C = x.shape
    x_nchw = jnp.transpose(x, (0, 2, 1)).reshape(B, C, H, W)
    # PyTorch depthwise weight layout is (C, 1, 3, 3) == OIHW with I=1.
    w_oihw = jnp.transpose(weight, (2, 0, 1))[:, None, :, :]
    y = jax.lax.conv_general_dilated(
        x_nchw.astype(jnp.float32), w_oihw.astype(jnp.float32),
        window_strides=(1, 1), padding=((1, 1), (1, 1)),
        feature_group_count=C, dimension_numbers=("NCHW", "OIHW", "NCHW"))
    y = y + bias.astype(jnp.float32)[None, :, None, None]
    return jnp.transpose(y.reshape(B, C, H * W), (0, 2, 1)).astype(x.dtype)


if __name__ == "__main__":
    # Small shapes consistent with the module: C channels, N = H*W tokens.
    key = jax.random.PRNGKey(0)
    kx, kw, kb, kx2, kw2, kb2 = jax.random.split(key, 6)

    B, H, W, C = 2, 8, 8, 64
    N = H * W
    x = jax.random.normal(kx, (B, N, C), dtype=jnp.float32)
    # Deterministic synthetic parameters (Conv2d(dim, dim, 3, groups=dim) -> (3,3,C) + (C,)).
    weight = jax.random.normal(kw, (3, 3, C), dtype=jnp.float32) * 0.1
    bias = jax.random.normal(kb, (C,), dtype=jnp.float32) * 0.1

    out = jax.block_until_ready(dwconv_pallas(x, weight, bias, H, W))
    ref = jax.block_until_ready(_reference_dwconv(x, weight, bias, H, W))
    assert out.shape == (B, N, C)
    np.testing.assert_allclose(np.asarray(out), np.asarray(ref), rtol=1e-5, atol=1e-5)

    # Odd-shape path: batch not divisible by the batch tile (zero-pad path),
    # H not a multiple of 8 (tail stripe), forced small block_batch.
    B2, H2, W2, C2 = 3, 10, 4, 32
    x2 = jax.random.normal(kx2, (B2, H2 * W2, C2), dtype=jnp.float32)
    w2 = jax.random.normal(kw2, (3, 3, C2), dtype=jnp.float32) * 0.1
    b2 = jax.random.normal(kb2, (C2,), dtype=jnp.float32) * 0.1
    out2 = jax.block_until_ready(dwconv_pallas(x2, w2, b2, H2, W2, block_batch=2))
    ref2 = jax.block_until_ready(_reference_dwconv(x2, w2, b2, H2, W2))
    np.testing.assert_allclose(np.asarray(out2), np.asarray(ref2), rtol=1e-5, atol=1e-5)

    print("KERNEL_OK")
</pallas_src>

<mosaic_0001>
module attributes {stable_mosaic.version = 11 : i64} {
  func.func @_dwconv_kernel(%arg0: i32, %arg1: memref<2x8x512xf32, #tpu.memory_space<vmem>>, %arg2: memref<9x8x512xf32, #tpu.memory_space<vmem>>, %arg3: memref<8x512xf32, #tpu.memory_space<vmem>>, %arg4: memref<2x8x512xf32, #tpu.memory_space<vmem>>) attributes {dimension_semantics = [#tpu.dimension_semantics<parallel>], iteration_bounds = array<i64: 1>, scalar_prefetch = 0 : i64, scratch_operands = 0 : i64, tpu.core_type = #tpu.core_type<tc>, window_params = [{transform_indices = @transform_0, window_bounds = array<i64: 2, 8, 512>}, {pipeline_mode = #tpu.pipeline_mode<synchronous>, transform_indices = @transform_1, window_bounds = array<i64: 9, 8, 512>}, {pipeline_mode = #tpu.pipeline_mode<synchronous>, transform_indices = @transform_2, window_bounds = array<i64: 8, 512>}, {transform_indices = @transform_3, window_bounds = array<i64: 2, 8, 512>}]} {
    %cst = arith.constant 0.000000e+00 : f32
    %0 = vector.broadcast %cst : f32 to vector<1x512xf32>
    %c0_i32 = arith.constant 0 : i32
    %c2_i32 = arith.constant 2 : i32
    %1 = arith.addi %c0_i32, %c2_i32 : i32
    %c1_i32 = arith.constant 1 : i32
    scf.for %arg5 = %c0_i32 to %1 step %c1_i32  : i32 {
      %2 = arith.index_cast %arg5 : i32 to index
      %c0 = arith.constant 0 : index
      %c0_1 = arith.constant 0 : index
      %3 = vector.load %arg1[%2, %c0, %c0_1] : memref<2x8x512xf32, #tpu.memory_space<vmem>>, vector<1x7x512xf32>
      %4 = vector.shape_cast %3 : vector<1x7x512xf32> to vector<7x512xf32>
      %5 = tpu.concatenate %0, %4 in 0 : vector<1x512xf32>, vector<7x512xf32> -> vector<8x512xf32>
      %6 = arith.index_cast %arg5 : i32 to index
      %c0_2 = arith.constant 0 : index
      %c0_3 = arith.constant 0 : index
      %7 = vector.load %arg1[%6, %c0_2, %c0_3] : memref<2x8x512xf32, #tpu.memory_space<vmem>>, vector<1x8x512xf32>
      %8 = vector.shape_cast %7 : vector<1x8x512xf32> to vector<8x512xf32>
      %9 = arith.index_cast %arg5 : i32 to index
      %c1 = arith.constant 1 : index
      %c0_4 = arith.constant 0 : index
      %10 = vector.load %arg1[%9, %c1, %c0_4] : memref<2x8x512xf32, #tpu.memory_space<vmem>>, vector<1x7x512xf32>
      %11 = vector.shape_cast %10 : vector<1x7x512xf32> to vector<7x512xf32>
      %12 = tpu.concatenate %11, %0 in 0 : vector<7x512xf32>, vector<1x512xf32> -> vector<8x512xf32>
      %c0_5 = arith.constant 0 : index
      %c0_6 = arith.constant 0 : index
      %13 = vector.load %arg3[%c0_5, %c0_6] : memref<8x512xf32, #tpu.memory_space<vmem>>, vector<8x512xf32>
      %c64_i32 = arith.constant 64 : i32
      %14 = tpu.dynamic_rotate %5 by %c64_i32 dim 1 : vector<8x512xf32>, i32 -> vector<8x512xf32>
      %c448_i32 = arith.constant 448 : i32
      %15 = tpu.dynamic_rotate %5 by %c448_i32 dim 1 : vector<8x512xf32>, i32 -> vector<8x512xf32>
      %c0_7 = arith.constant 0 : index
      %c0_8 = arith.constant 0 : index
      %c0_9 = arith.constant 0 : index
      %16 = vector.load %arg2[%c0_7, %c0_8, %c0_9] : memref<9x8x512xf32, #tpu.memory_space<vmem>>, vector<1x8x512xf32>
      %17 = vector.shape_cast %16 : vector<1x8x512xf32> to vector<8x512xf32>
      %18 = arith.mulf %14, %17 : vector<8x512xf32>
      %19 = arith.addf %13, %18 : vector<8x512xf32>
      %c1_10 = arith.constant 1 : index
      %c0_11 = arith.constant 0 : index
      %c0_12 = arith.constant 0 : index
      %20 = vector.load %arg2[%c1_10, %c0_11, %c0_12] : memref<9x8x512xf32, #tpu.memory_space<vmem>>, vector<1x8x512xf32>
      %21 = vector.shape_cast %20 : vector<1x8x512xf32> to vector<8x512xf32>
      %22 = arith.mulf %5, %21 : vector<8x512xf32>
      %23 = arith.addf %19, %22 : vector<8x512xf32>
      %c2 = arith.constant 2 : index
      %c0_13 = arith.constant 0 : index
      %c0_14 = arith.constant 0 : index
      %24 = vector.load %arg2[%c2, %c0_13, %c0_14] : memref<9x8x512xf32, #tpu.memory_space<vmem>>, vector<1x8x512xf32>
      %25 = vector.shape_cast %24 : vector<1x8x512xf32> to vector<8x512xf32>
      %26 = arith.mulf %15, %25 : vector<8x512xf32>
      %27 = arith.addf %23, %26 : vector<8x512xf32>
      %c64_i32_15 = arith.constant 64 : i32
      %28 = tpu.dynamic_rotate %8 by %c64_i32_15 dim 1 : vector<8x512xf32>, i32 -> vector<8x512xf32>
      %c448_i32_16 = arith.constant 448 : i32
      %29 = tpu.dynamic_rotate %8 by %c448_i32_16 dim 1 : vector<8x512xf32>, i32 -> vector<8x512xf32>
      %c3 = arith.constant 3 : index
      %c0_17 = arith.constant 0 : index
      %c0_18 = arith.constant 0 : index
      %30 = vector.load %arg2[%c3, %c0_17, %c0_18] : memref<9x8x512xf32, #tpu.memory_space<vmem>>, vector<1x8x512xf32>
      %31 = vector.shape_cast %30 : vector<1x8x512xf32> to vector<8x512xf32>
      %32 = arith.mulf %28, %31 : vector<8x512xf32>
      %33 = arith.addf %27, %32 : vector<8x512xf32>
      %c4 = arith.constant 4 : index
      %c0_19 = arith.constant 0 : index
      %c0_20 = arith.constant 0 : index
      %34 = vector.load %arg2[%c4, %c0_19, %c0_20] : memref<9x8x512xf32, #tpu.memory_space<vmem>>, vector<1x8x512xf32>
      %35 = vector.shape_cast %34 : vector<1x8x512xf32> to vector<8x512xf32>
      %36 = arith.mulf %8, %35 : vector<8x512xf32>
      %37 = arith.addf %33, %36 : vector<8x512xf32>
      %c5 = arith.constant 5 : index
      %c0_21 = arith.constant 0 : index
      %c0_22 = arith.constant 0 : index
      %38 = vector.load %arg2[%c5, %c0_21, %c0_22] : memref<9x8x512xf32, #tpu.memory_space<vmem>>, vector<1x8x512xf32>
      %39 = vector.shape_cast %38 : vector<1x8x512xf32> to vector<8x512xf32>
      %40 = arith.mulf %29, %39 : vector<8x512xf32>
      %41 = arith.addf %37, %40 : vector<8x512xf32>
      %c64_i32_23 = arith.constant 64 : i32
      %42 = tpu.dynamic_rotate %12 by %c64_i32_23 dim 1 : vector<8x512xf32>, i32 -> vector<8x512xf32>
      %c448_i32_24 = arith.constant 448 : i32
      %43 = tpu.dynamic_rotate %12 by %c448_i32_24 dim 1 : vector<8x512xf32>, i32 -> vector<8x512xf32>
      %c6 = arith.constant 6 : index
      %c0_25 = arith.constant 0 : index
      %c0_26 = arith.constant 0 : index
      %44 = vector.load %arg2[%c6, %c0_25, %c0_26] : memref<9x8x512xf32, #tpu.memory_space<vmem>>, vector<1x8x512xf32>
      %45 = vector.shape_cast %44 : vector<1x8x512xf32> to vector<8x512xf32>
      %46 = arith.mulf %42, %45 : vector<8x512xf32>
      %47 = arith.addf %41, %46 : vector<8x512xf32>
      %c7 = arith.constant 7 : index
      %c0_27 = arith.constant 0 : index
      %c0_28 = arith.constant 0 : index
      %48 = vector.load %arg2[%c7, %c0_27, %c0_28] : memref<9x8x512xf32, #tpu.memory_space<vmem>>, vector<1x8x512xf32>
      %49 = vector.shape_cast %48 : vector<1x8x512xf32> to vector<8x512xf32>
      %50 = arith.mulf %12, %49 : vector<8x512xf32>
      %51 = arith.addf %47, %50 : vector<8x512xf32>
      %c8 = arith.constant 8 : index
      %c0_29 = arith.constant 0 : index
      %c0_30 = arith.constant 0 : index
      %52 = vector.load %arg2[%c8, %c0_29, %c0_30] : memref<9x8x512xf32, #tpu.memory_space<vmem>>, vector<1x8x512xf32>
      %53 = vector.shape_cast %52 : vector<1x8x512xf32> to vector<8x512xf32>
      %54 = arith.mulf %43, %53 : vector<8x512xf32>
      %55 = arith.addf %51, %54 : vector<8x512xf32>
      %56 = arith.index_cast %arg5 : i32 to index
      %c0_31 = arith.constant 0 : index
      %c0_32 = arith.constant 0 : index
      %57 = vector.load %arg4[%56, %c0_31, %c0_32] : memref<2x8x512xf32, #tpu.memory_space<vmem>>, vector<1x8x512xf32>
      %58 = vector.shape_cast %57 : vector<1x8x512xf32> to vector<8x512xf32>
      %59 = vector.shape_cast %55 : vector<8x512xf32> to vector<1x8x512xf32>
      tpu.vector_store %arg4[%56, %c0_31, %c0_32], %59 {strides = array<i32>} : memref<2x8x512xf32, #tpu.memory_space<vmem>>, vector<1x8x512xf32>,
    }
    %c2_i32_0 = arith.constant 2 : i32
    return
  }
  func.func @transform_0(%arg0: i32) -> (i32, i32, i32) {
    %c0_i32 = arith.constant 0 : i32
    %c0_i32_0 = arith.constant 0 : i32
    %c0_i32_1 = arith.constant 0 : i32
    return %arg0, %c0_i32, %c0_i32_0 : i32, i32, i32
  }
  func.func @transform_1(%arg0: i32) -> (i32, i32, i32) {
    %c0_i32 = arith.constant 0 : i32
    %c0_i32_0 = arith.constant 0 : i32
    %c0_i32_1 = arith.constant 0 : i32
    %c0_i32_2 = arith.constant 0 : i32
    return %c0_i32, %c0_i32_0, %c0_i32_1 : i32, i32, i32
  }
  func.func @transform_2(%arg0: i32) -> (i32, i32) {
    %c0_i32 = arith.constant 0 : i32
    %c0_i32_0 = arith.constant 0 : i32
    %c0_i32_1 = arith.constant 0 : i32
    return %c0_i32, %c0_i32_0 : i32, i32
  }
  func.func @transform_3(%arg0: i32) -> (i32, i32, i32) {
    %c0_i32 = arith.constant 0 : i32
    %c0_i32_0 = arith.constant 0 : i32
    %c0_i32_1 = arith.constant 0 : i32
    return %arg0, %c0_i32, %c0_i32_0 : i32, i32, i32
  }
}

</mosaic_0001>

<bundles_post_ra>
// kernel: tpu_custom_call.1
= control target key start
LH: loop header
LB: loop body
LE: loop exit
PB: predicated region body
PF: predicated region fallthrough
CT: control target
= control target key end

     0   :  { %8 = vsyncpa [#allocation3], 0  ;;  %s563_s0 = inlined_call_operand.hbm [shape: f32[2,8,512], index: 0, kind: input, shape index: {}]   ;;  %s564_s1 = inlined_call_operand.hbm [shape: f32[9,8,512], index: 1, kind: input, shape index: {}]   ;;  %s565_s2 = inlined_call_operand.hbm [shape: f32[8,512], index: 2, kind: input, shape index: {}]   ;;  %s566_s3 = inlined_call_operand.hbm [shape: f32[2,8,512], index: 3, kind: output, shape index: {}]  }
   0x1   :  { %9 = vsyncpa [#allocation6], 0 }
   0x2   :  { %10 = vsyncpa [#allocation4], 0  ;;  %s415_s12 = smov [#allocation5]   ;;  %s416_s14 = smov [#allocation2]  }
   0x3   :  { %s28_s13 = sshll.u32 %s415_s12, 4  ;;  %s16_s15 = sshll.u32 %s416_s14, 4  ;;  %s29_s13 = int_to_ptr.vmem [resolvable:$true] %s28_s13  ;;  %s17_s15 = int_to_ptr.vmem [resolvable:$true] %s16_s15 }
   0x4   :  { %s329_s16 = scalar_lea.vmem %s29_s13, 4608  ;;  %p334_p1 = scmp.lt.s32.totalorder %s29_s13, %s29_s13 }
   0x5   :  { %p330_p0 = scmp.ne.s32.totalorder %s29_s13, %s329_s16  ;;  %p335_p2 = scmp.lt.s32.totalorder %s329_s16, %s329_s16 }
   0x7   :  { %p336_p3 = por %p335_p2, %p334_p1 }
   0x9   :  { %p337_p4 = pnand %p336_p3, %p330_p0 }
   0xb   :  { %340 = shalt.err (!%p337_p4)
}
   0xc   :  { %s417_s17 = smov 512   ;;  %s418_s18 = smov 32  }
   0xd   :  { %34 = dma.hbm_to_vmem [thread:$0]  %s564_s1, 4608, %s29_s13, [#allocation6], %s417_s17, %s417_s17, %s418_s18  }
   0xe   :  { %s349_s21 = scalar_lea.vmem %s17_s15, 1024  ;;  %p354_p6 = scmp.lt.s32.totalorder %s17_s15, %s17_s15 }
   0xf   :  { %p350_p5 = scmp.ne.s32.totalorder %s17_s15, %s349_s21  ;;  %p355_p7 = scmp.lt.s32.totalorder %s349_s21, %s349_s21 }
  0x11   :  { %p356_p8 = por %p355_p7, %p354_p6 }
  0x13   :  { %p357_p9 = pnand %p356_p8, %p350_p5 }
  0x15   :  { %360 = shalt.err (!%p357_p9)
}
  0x16   :  { %22 = dma.hbm_to_vmem [thread:$0]  %s563_s0, 1024, %s17_s15, [#allocation3], %s417_s17, %s417_s17, %s418_s18  }
  0x17   :  { %s419_s24 = smov [#allocation7]  }
  0x18   :  { %s41_s25 = sshll.u32 %s419_s24, 4  ;;  %s42_s25 = int_to_ptr.vmem [resolvable:$true] %s41_s25 }
  0x19   :  { %s369_s26 = scalar_lea.vmem %s42_s25, 512  ;;  %p374_p11 = scmp.lt.s32.totalorder %s42_s25, %s42_s25 }
  0x1a   :  { %p370_p10 = scmp.ne.s32.totalorder %s42_s25, %s369_s26  ;;  %p375_p12 = scmp.lt.s32.totalorder %s369_s26, %s369_s26 }
  0x1c   :  { %p376_p13 = por %p375_p12, %p374_p11 }
  0x1e   :  { %p377_p0 = pnand %p376_p13, %p370_p10 }
  0x20   :  { %380 = shalt.err (!%p377_p0)
}
  0x21   :  { %44 = dma.hbm_to_vmem [thread:$0]  %s565_s2, 512, %s42_s25, [#allocation6]  }
  0x22   :  { %405 = dma.done.wait [#allocation3], 1024  }
  0x23   :  { %406 = vsyncadd [#allocation3], 4294966272 }
  0x24   :  { %407 = dma.done.wait [#allocation6], 5120  }
  0x25   :  { %408 = vsyncadd [#allocation6], 4294962176  ;;  %s457_s28 = smov 0  }
  0x26 LB: > { %s304_s0 = sshll.u32 %s413_s28, 5  ;;  %vm79_vm0 = vcmask 1040384   ;;  %s420_s2 = smov 64   ;;  %vm104_vm1 = vcmask 1046528   ;;  %v121_v28 = vlaneseq  ;;  %v193_v32 = vld [vmem:[#allocation5 + $0x88] sm:$0xff]  ;;  %v192_v33 = vld [vmem:[#allocation5 + $0x80] sm:$0xff]  ;;  %s413_s28 = sphi %s457_s28, %s59_s28  }
  0x27   : > { %s465_s29 = scalar_lea.vmem [#allocation2], %s304_s0  ;;  %v143_v34 = vld [vmem:[#allocation5 + $0x30] sm:$0xff]  ;;  %v141_v37 = vld [vmem:[#allocation5 + $0x20] sm:$0xff]  ;;  %v195_v38 = vld [vmem:[#allocation5 + $0x98] sm:$0xff]  ;;  %s269_s30 = scalar_lea.vmem [#allocation8], %s304_s0 }
  0x28   : > { %v85_v0 = vld [vmem:[%s465_s29 + $0x8] sm:$0xff]  ;;  %v84_v1 = vld [vmem:[%s465_s29] sm:$0xff]  ;;  %v65_v2 = vld [vmem:[%s465_s29 + $0x10] sm:$0x7f]  ;;  %v503_v31 = vand.u32 127, %v121_v28  ;;  %s59_s28 = sadd.s32 1, %s413_s28  }
  0x29   : > { %168 = vrot.lane.b32.xlu1 %v85_v0, %s420_s2  ;;  %166 = vrot.lane.b32.xlu0 %v84_v1, %s420_s2  ;;  %v73_v3 = vrot.slane %v65_v2, 7  ;;  %v63_v4 = vld [vmem:[%s465_s29] sm:$0x7f]  ;;  %v66_v5 = vld [vmem:[%s465_s29 + $0x18] sm:$0x7f]  ;;  %v194_v39 = vld [vmem:[#allocation5 + $0x90] sm:$0xff]  ;;  %v505_v42 = vmul.f32 %v193_v32, %v85_v0  ;;  %v507_v43 = vmul.f32 %v192_v33, %v84_v1 }
  0x2a   : > { %v71_v6 = vrot.slane %v63_v4, 7  ;;  %v74_v7 = vrot.slane %v66_v5, 7  ;;  %v64_v8 = vld [vmem:[%s465_s29 + $0x8] sm:$0x7f]  ;;  %v88_v15 = vld [vmem:[%s465_s29] sm:$0xfe] }
  0x2b   : > { %v82_v9 = vsel %vm79_vm0, 0.0, %v73_v3  ;;  %v72_v10 = vrot.slane %v64_v8, 7  ;;  %v89_v14 = vld [vmem:[%s465_s29 + $0x8] sm:$0xfe]  ;;  %v87_v16 = vld [vmem:[%s465_s29 + $0x18] sm:$0xff]  ;;  %v86_v17 = vld [vmem:[%s465_s29 + $0x10] sm:$0xff] }
  0x2c   : > { %v80_v11 = vsel %vm79_vm0, 0.0, %v71_v6  ;;  %v83_v12 = vsel %vm79_vm0, 0.0, %v74_v7  ;;  %v97_v18 = vrot.slane %v89_v14, 1  ;;  %v96_v19 = vrot.slane %v88_v15, 1  ;;  %v91_v20 = vld [vmem:[%s465_s29 + $0x18] sm:$0xfe] }
  0x2d   : > { %117 = vrot.lane.b32.xlu1 %v82_v9, %s420_s2  ;;  %113 = vrot.lane.b32.xlu0 %v80_v11, %s420_s2  ;;  %v81_v13 = vsel %vm79_vm0, 0.0, %v72_v10  ;;  %v90_v21 = vld [vmem:[%s465_s29 + $0x10] sm:$0xfe]  ;;  %v99_v24 = vrot.slane %v91_v20, 1  ;;  %v144_v40 = vld [vmem:[#allocation5 + $0x38] sm:$0xff]  ;;  %v142_v41 = vld [vmem:[#allocation5 + $0x28] sm:$0xff]  ;;  %v147_v47 = vmul.f32 %v143_v34, %v82_v9  ;;  %v145_v48 = vmul.f32 %v141_v37, %v80_v11 }
  0x2e   : > { %v106_v22 = vsel %vm104_vm1, %v97_v18, 0.0  ;;  %v105_v23 = vsel %vm104_vm1, %v96_v19, 0.0  ;;  %v98_v25 = vrot.slane %v90_v21, 1  ;;  %v244_v44 = vld [vmem:[#allocation5 + $0xe8] sm:$0xff]  ;;  %vm123_vm2 = vcmp.lt.s32.totalorder %v503_v31, 64  ;;  %v128_v45 = vld [vmem:[#allocation5] sm:$0xff] }
  0x2f   : > { %v493_v26 = vsel %vm104_vm1, %v99_v24, 0.0  ;;  %v131_v46 = vld [vmem:[#allocation5 + $0x18] sm:$0xff]  ;;  %v510_v49 = vmul.f32 %v195_v38, %v87_v16  ;;  %v512_v50 = vmul.f32 %v194_v39, %v86_v17  ;;  %v243_v51 = vld [vmem:[#allocation5 + $0xe0] sm:$0xff]  ;;  %v129_v53 = vld [vmem:[#allocation5 + $0x8] sm:$0xff]  ;;  %v148_v63 = vmul.f32 %v144_v40, %v83_v12  ;;  %p56_p1 = scmp.ge.s32.totalorder %s59_s28, 2  }
  0x30   : > { %v495_v27 = vsel %vm104_vm1, %v98_v25, 0.0  ;;  %v130_v54 = vld [vmem:[#allocation5 + $0x10] sm:$0xff]  ;;  %v109_v56 = vld [vmem:[#allocation7] sm:$0xff]  ;;  %v112_v57 = vld [vmem:[#allocation7 + $0x18] sm:$0xff]  ;;  %v146_v0 = vmul.f32 %v142_v41, %v81_v13  ;;  %v522_v5 = vmul.f32 %v244_v44, %v106_v22  ;;  %v524_v6 = vmul.f32 %v243_v51, %v105_v23  ;;  %s421_s4 = smov (%p56_p1), [#allocation8]  }
  0x31   : > { %119 = vrot.lane.b32.xlu1 %v83_v12, %s420_s2  ;;  %115 = vrot.lane.b32.xlu0 %v81_v13, %s420_s2  ;;  %v156_v58 = vld [vmem:[#allocation5 + $0x50] sm:$0xff]  ;;  %v110_v3 = vld [vmem:[#allocation7 + $0x8] sm:$0xff]  ;;  %v157_v7 = vld [vmem:[#allocation5 + $0x58] sm:$0xff]  ;;  %s279_s5 = sshll.u32 (%p56_p1), %s421_s4, 4  ;;  %s280_s5 = int_to_ptr.vmem [resolvable:$true] %s279_s5 }
  0x32   : > { %v111_v4 = vld [vmem:[#allocation7 + $0x10] sm:$0xff]  ;;  %v154_v8 = vld [vmem:[#allocation5 + $0x40] sm:$0xff]  ;;  %v155_v13 = vld [vmem:[#allocation5 + $0x48] sm:$0xff]  ;;  %s381_s6 = scalar_lea.vmem (%p56_p1), %s280_s5, 1024  ;;  %p386_p3 = scmp.lt.s32.totalorder (%p56_p1), %s280_s5, %s280_s5 }
  0x33   : > { %v179_v20 = vld [vmem:[#allocation5 + $0x60] sm:$0xff]  ;;  %v180_v24 = vld [vmem:[#allocation5 + $0x68] sm:$0xff]  ;;  %v181_v34 = vld [vmem:[#allocation5 + $0x70] sm:$0xff]  ;;  %p382_p2 = scmp.ne.s32.totalorder (%p56_p1), %s280_s5, %s381_s6  ;;  %p387_p4 = scmp.lt.s32.totalorder (%p56_p1), %s381_s6, %s381_s6 }
  0x34   : > { %v208_v44 = vld [vmem:[#allocation5 + $0xb8] sm:$0xff] }
  0x35   : > { %172 = vrot.lane.b32.xlu1 %v87_v16, %s420_s2  ;;  %170 = vrot.lane.b32.xlu0 %v86_v17, %s420_s2  ;;  %p388_p5 = por (%p56_p1), %p387_p4, %p386_p3 }
  0x37   :  { %p389_p6 = pnand (%p56_p1), %p388_p5, %p382_p2 }
  0x39   : > { %219 = vrot.lane.b32.xlu1 %v106_v22, %s420_s2  ;;  %217 = vrot.lane.b32.xlu0 %v105_v23, %s420_s2  ;;  %v182_v22 = vld [vmem:[#allocation5 + $0x78] sm:$0xff] }
  0x3d   : > { %223 = vrot.lane.b32.xlu1 %v493_v26, %s420_s2  ;;  %221 = vrot.lane.b32.xlu0 %v495_v27, %s420_s2 }
  0x9b   : > { %v501_v29 = vpop.permute.xlu1 %168  ;;  %v167_v30 = vpop.permute.xlu0 %166 }
  0x9c   : > { %v176_v11 = vsel %vm123_vm2, %v167_v30, %v501_v29 }
  0x9f   : > { %v118_v35 = vpop.permute.xlu1 %117  ;;  %v114_v36 = vpop.permute.xlu0 %113 }
  0xa3   : > { %v120_v52 = vpop.permute.xlu1 %119  ;;  %v116_v55 = vpop.permute.xlu0 %115 }
  0xa4   : > { %v124_v59 = vsel %vm123_vm2, %v118_v35, %v120_v52  ;;  %v127_v60 = vsel %vm123_vm2, %v120_v52, %v114_v36  ;;  %v125_v61 = vsel %vm123_vm2, %v116_v55, %v118_v35  ;;  %v126_v62 = vsel %vm123_vm2, %v114_v36, %v116_v55  ;;  %v246_v35 = vld [vmem:[#allocation5 + $0xf8] sm:$0xff]  ;;  %v205_v36 = vld [vmem:[#allocation5 + $0xa0] sm:$0xff]  ;;  %v206_v55 = vld [vmem:[#allocation5 + $0xa8] sm:$0xff] }
  0xa5   : > { %v132_v1 = vmul.f32 %v128_v45, %v127_v60  ;;  %v135_v2 = vmul.f32 %v131_v46, %v124_v59  ;;  %v133_v9 = vmul.f32 %v129_v53, %v126_v62  ;;  %v134_v10 = vmul.f32 %v130_v54, %v125_v61 }
  0xa6   : > { %v160_v12 = vmul.f32 %v156_v58, %v124_v59  ;;  %v161_v28 = vmul.f32 %v157_v7, %v127_v60  ;;  %v158_v33 = vmul.f32 %v154_v8, %v126_v62  ;;  %v159_v39 = vmul.f32 %v155_v13, %v125_v61 }
  0xa7   : > { %v136_v14 = vadd.f32 %v132_v1, %v109_v56  ;;  %v139_v15 = vadd.f32 %v135_v2, %v112_v57  ;;  %v173_v16 = vpop.permute.xlu1 %172  ;;  %v171_v17 = vpop.permute.xlu0 %170  ;;  %v137_v18 = vadd.f32 %v133_v9, %v110_v3  ;;  %v138_v19 = vadd.f32 %v134_v10, %v111_v4  ;;  %v207_v56 = vld [vmem:[#allocation5 + $0xb0] sm:$0xff]  ;;  %v230_v1 = vld [vmem:[#allocation5 + $0xc0] sm:$0xff]  ;;  %v233_v9 = vld [vmem:[#allocation5 + $0xd8] sm:$0xff] }
  0xa8   : > { %v177_v21 = vsel %vm123_vm2, %v173_v16, %v167_v30  ;;  %v174_v23 = vsel %vm123_vm2, %v171_v17, %v173_v16  ;;  %v175_v40 = vsel %vm123_vm2, %v501_v29, %v171_v17  ;;  %v184_v53 = vmul.f32 %v180_v24, %v176_v11  ;;  %v245_v10 = vld [vmem:[#allocation5 + $0xf0] sm:$0xff]  ;;  %v257_v24 = vld [vmem:[#allocation5 + $0x108] sm:$0xff] }
  0xa9   : > { %v152_v25 = vadd.f32 %v148_v63, %v139_v15  ;;  %v149_v32 = vadd.f32 %v145_v48, %v136_v14  ;;  %v150_v37 = vadd.f32 %v146_v0, %v137_v18  ;;  %v151_v38 = vadd.f32 %v147_v47, %v138_v19  ;;  %v231_v63 = vld [vmem:[#allocation5 + $0xc8] sm:$0xff] }
  0xaa   : > { %v183_v45 = vmul.f32 %v179_v20, %v177_v21  ;;  %v186_v46 = vmul.f32 %v182_v22, %v174_v23  ;;  %v185_v57 = vmul.f32 %v181_v34, %v175_v40  ;;  %v250_v47 = vmul.f32 %v246_v35, %v493_v26  ;;  %v256_v20 = vld [vmem:[#allocation5 + $0x100] sm:$0xff]  ;;  %v259_v22 = vld [vmem:[#allocation5 + $0x118] sm:$0xff] }
  0xab   : > { %v165_v30 = vadd.f32 %v161_v28, %v152_v25  ;;  %v162_v41 = vadd.f32 %v158_v33, %v149_v32  ;;  %v220_v51 = vpop.permute.xlu1 %219  ;;  %v218_v52 = vpop.permute.xlu0 %217  ;;  %v163_v48 = vadd.f32 %v159_v39, %v150_v37  ;;  %v164_v54 = vadd.f32 %v160_v12, %v151_v38  ;;  %v232_v12 = vld [vmem:[#allocation5 + $0xd0] sm:$0xff] }
  0xac   : > { %v209_v58 = vmul.f32 %v205_v36, %v176_v11  ;;  %v212_v29 = vmul.f32 %v208_v44, %v177_v21  ;;  %v227_v0 = vsel %vm123_vm2, %v218_v52, %v220_v51  ;;  %v210_v4 = vmul.f32 %v206_v55, %v175_v40  ;;  %v258_v32 = vld [vmem:[#allocation5 + $0x110] sm:$0xff] }
  0xad   : > { %v187_v59 = vadd.f32 %v183_v45, %v162_v41  ;;  %v190_v60 = vadd.f32 %v186_v46, %v165_v30  ;;  %v188_v61 = vadd.f32 %v184_v53, %v163_v48  ;;  %v189_v62 = vadd.f32 %v185_v57, %v164_v54 }
  0xae   : > { %v211_v7 = vmul.f32 %v207_v56, %v174_v23  ;;  %v260_v34 = vmul.f32 %v256_v20, %v227_v0 }
  0xaf   : > { %v200_v2 = vadd.f32 %v507_v43, %v187_v59  ;;  %v203_v3 = vadd.f32 %v510_v49, %v190_v60  ;;  %v224_v8 = vpop.permute.xlu1 %223  ;;  %v222_v26 = vpop.permute.xlu0 %221  ;;  %v201_v11 = vadd.f32 %v505_v42, %v188_v61  ;;  %v202_v14 = vadd.f32 %v512_v50, %v189_v62 }
  0xb0   : > { %v228_v15 = vsel %vm123_vm2, %v224_v8, %v218_v52  ;;  %v225_v13 = vsel %vm123_vm2, %v222_v26, %v224_v8  ;;  %v235_v43 = vmul.f32 %v231_v63, %v227_v0  ;;  %v226_v21 = vsel %vm123_vm2, %v220_v51, %v222_v26 }
  0xb1   : > { %v213_v16 = vadd.f32 %v209_v58, %v200_v2  ;;  %v234_v49 = vmul.f32 %v230_v1, %v228_v15  ;;  %v216_v17 = vadd.f32 %v212_v29, %v203_v3  ;;  %v214_v18 = vadd.f32 %v210_v4, %v201_v11 }
  0xb2   : > { %v215_v19 = vadd.f32 %v211_v7, %v202_v14  ;;  %v237_v42 = vmul.f32 %v233_v9, %v225_v13  ;;  %v249_v50 = vmul.f32 %v245_v10, %v495_v27  ;;  %v236_v25 = vmul.f32 %v232_v12, %v226_v21 }
  0xb3   : > { %v238_v23 = vadd.f32 %v234_v49, %v213_v16  ;;  %v239_v28 = vadd.f32 %v235_v43, %v214_v18  ;;  %v263_v37 = vmul.f32 %v259_v22, %v228_v15  ;;  %v261_v39 = vmul.f32 %v257_v24, %v226_v21 }
  0xb4   : > { %v241_v33 = vadd.f32 %v237_v42, %v216_v17  ;;  %v240_v36 = vadd.f32 %v236_v25, %v215_v19  ;;  %v262_v27 = vmul.f32 %v258_v32, %v225_v13 }
  0xb5   : > { %v251_v35 = vadd.f32 %v524_v6, %v238_v23  ;;  %v252_v38 = vadd.f32 %v522_v5, %v239_v28 }
  0xb6   : > { %v254_v31 = vadd.f32 %v250_v47, %v241_v33  ;;  %v253_v30 = vadd.f32 %v249_v50, %v240_v36  ;;  %58 = sbr.rel (!%p56_p1) target bundleno = 38 (0x26), region = 61 }
  0xb7   : > { %v264_v40 = vadd.f32 %v260_v34, %v251_v35  ;;  %v265_v41 = vadd.f32 %v261_v39, %v252_v38 }
  0xb8   : > { %v267_v44 = vadd.f32 %v263_v37, %v254_v31  ;;  %v266_v45 = vadd.f32 %v262_v27, %v253_v30 }
  0xb9   : > { %270 = vst [vmem:[%s269_s30] sm:$0xff] %v264_v40  ;;  %271 = vst [vmem:[%s269_s30 + $0x8] sm:$0xff] %v265_v41 }
  0xba   : > { %273 = vst [vmem:[%s269_s30 + $0x18] sm:$0xff] %v267_v44  ;;  %272 = vst [vmem:[%s269_s30 + $0x10] sm:$0xff] %v266_v45 }
  0xbb   :  { %392 = shalt.err (!%p389_p6)
}
  0xbc   :  { %285 = dma.vmem_to_hbm [thread:$0]  %s280_s5, 1024, %s566_s3, [#allocation4], %s417_s17, %s417_s17, %s418_s18  }
  0xbd   :  { %409 = dma.done.wait [#allocation4], 1024  }
  0xbe   :  { %410 = vsyncadd [#allocation4], 4294966272 }
  0xbf   :  { %289 = vsyncpa [#allocation3], 1 }
  0xc0   :  { %290 = vsyncpa [#allocation6], 1 }
  0xc1   :  { %291 = vsyncpa [#allocation4], 1 }

</bundles_post_ra>
